<compile_context>
chip_gen: v7x
topology: tpu7x:2x2x1
jax: 0.10.0
libtpu: 0.0.40
codegen_flags: <defaults>
</compile_context>

<pallas_src>
from functools import partial

import numpy as np
import jax
import jax.numpy as jnp
from jax.experimental import pallas as pl
from jax.experimental.pallas import tpu as pltpu

LANE = 128  # TPU lane width


def _const_diag_gaussian_kernel(loc_ref, scale_ref, const_ref, eps_ref,
                                z_ref, logp_ref, *, d, pack):
    eps = eps_ref[...]                                   # (TILE_R, LANES) f32

    # z = loc + scale * eps  (VPU elementwise, lane-dense store).
    z_ref[...] = loc_ref[...] + scale_ref[...] * eps

    # log_p = const - 0.5 * sum_d eps^2 per packed sample.  Segmented reduce is
    # a static lane-slice + cross-lane sum per segment (VPU/XLU, slots with
    # slack) instead of an f32 MXU matmul whose vmatmul cadence could out-run
    # the per-tile DMA budget on v6e/v7x.
    sq = eps * eps
    const = const_ref[...]                               # (1, PACK) hoisted constant
    for p in range(pack):                                # static unroll
        part = jnp.sum(sq[:, p * d:(p + 1) * d], axis=1, keepdims=True)  # (TILE_R, 1)
        logp_ref[:, p:p + 1] = const[:, p:p + 1] - 0.5 * part


def const_diag_gaussian_forward(eps, loc, scale, tile_rows=4096):
    """eps: (B, S, D); loc: (D,); scale: (D,) -> (z (B,S,D), log_p (B,S))."""
    B, S, D = eps.shape
    BS = B * S

    # Lane packing: PACK samples side-by-side on the 128-lane axis.
    # TODO(synk): if 128 % D != 0 we fall back to pack=1 (lane-sparse blocks with
    # masked stores) -- correct, but not the tuned fast path.
    pack = LANE // D if (D <= LANE and LANE % D == 0) else 1
    lanes = pack * D

    eps2d = eps.reshape(BS, D).astype(jnp.float32)
    rows_exact = pl.cdiv(BS, pack)                       # packed rows actually needed

    # ---- Row-tile selection (review feedback) ------------------------------
    # Double-buffered per-row VMEM bytes: eps + z (lanes wide) + the lane-padded
    # log_p block (pads to 128 lanes in VMEM even though only PACK are used).
    logp_pad_lanes = max(LANE, pl.cdiv(pack, LANE) * LANE)
    db_bytes_per_row = 2 * (2 * lanes + logp_pad_lanes) * 4
    vmem_budget = 24 * 2**20                             # safe on v7x (64 MiB physical)
    tile_cap = max(8, (vmem_budget // db_bytes_per_row) // 8 * 8)

    if rows_exact <= 8:
        tile_r = rows_exact                              # single tiny tile (== full dim)
    else:
        # Big tiles to amortize per-step overhead, but >= 2 grid steps so both
        # v7x TensorCores get work; keep (8,128) legality.
        tile_r = min(tile_rows, tile_cap, pl.cdiv(rows_exact, 2))
        tile_r = max(8, pl.cdiv(tile_r, 8) * 8)
    rows_padded = pl.cdiv(rows_exact, tile_r) * tile_r
    grid = (rows_padded // tile_r,)

    total_unpacked = rows_padded * pack
    if total_unpacked != BS:
        eps2d = jnp.pad(eps2d, ((0, total_unpacked - BS), (0, 0)))
    eps_packed = eps2d.reshape(rows_padded, lanes)       # free row-major reshape

    loc32 = loc.astype(jnp.float32).reshape(1, D)
    scale32 = scale.astype(jnp.float32).reshape(1, D)
    loc_row = jnp.tile(loc32, (1, pack))                 # (1, LANES)
    scale_row = jnp.tile(scale32, (1, pack))             # (1, LANES)

    # Hoisted constant:  -0.5*d*log(2*pi) - sum(log(scale))
    total_const = (jnp.float32(-0.5 * D * np.log(2.0 * np.pi))
                   - jnp.sum(jnp.log(scale32)))
    const_row = jnp.full((1, pack), total_const, dtype=jnp.float32)

    # Explicit scoped-VMEM limit matching the chosen tile (plus headroom).
    vmem_limit = int(min(max(db_bytes_per_row * tile_r + (4 << 20), 16 << 20),
                         48 << 20))

    kernel = partial(_const_diag_gaussian_kernel, d=D, pack=pack)
    z_packed, logp_packed = pl.pallas_call(
        kernel,
        out_shape=(
            jax.ShapeDtypeStruct((rows_padded, lanes), jnp.float32),
            jax.ShapeDtypeStruct((rows_padded, pack), jnp.float32),
        ),
        grid=grid,
        in_specs=[
            pl.BlockSpec((1, lanes), lambda i: (0, 0)),        # loc (resident)
            pl.BlockSpec((1, lanes), lambda i: (0, 0)),        # scale (resident)
            pl.BlockSpec((1, pack), lambda i: (0, 0)),         # hoisted constant
            pl.BlockSpec((tile_r, lanes), lambda i: (i, 0)),   # eps row-tile
        ],
        out_specs=(
            pl.BlockSpec((tile_r, lanes), lambda i: (i, 0)),   # z row-tile
            pl.BlockSpec((tile_r, pack), lambda i: (i, 0)),    # log_p (packed)
        ),
        compiler_params=pltpu.CompilerParams(
            dimension_semantics=("parallel",),
            vmem_limit_bytes=vmem_limit,
        ),
    )(loc_row, scale_row, const_row, eps_packed)

    # Undo packing (free row-major reshapes) and drop row padding.
    z = z_packed.reshape(rows_padded * pack, D)[:BS].reshape(B, S, D)
    log_p = logp_packed.reshape(rows_padded * pack)[:BS].reshape(B, S)
    return z, log_p


if __name__ == "__main__":
    # Deterministic parameter init (synthetic; no checkpoint load).
    D = 32            # dimensionality of the Gaussian
    B = 2             # batch size (len(x) in the PyTorch module)
    S = 8             # num_samples

    loc = jnp.linspace(-1.0, 1.0, D, dtype=jnp.float32)
    scale = 0.5 + 0.1 * jnp.arange(D, dtype=jnp.float32)  # strictly positive

    key = jax.random.PRNGKey(0)
    k_x, k_eps = jax.random.split(key)
    # x only determines the batch size in the reference module.
    x = jax.random.normal(k_x, (B, 4, 16, 16), dtype=jnp.float32)
    batch_size = x.shape[0]
    # eps ~ N(0,1); random draw in plain JAX (glue), hot path in the kernel.
    eps = jax.random.normal(k_eps, (batch_size, S, D), dtype=jnp.float32)

    z, log_p = const_diag_gaussian_forward(eps, loc, scale)
    jax.block_until_ready((z, log_p))

    # Reference check in plain JAX.
    z_ref = loc.reshape(1, 1, D) + scale.reshape(1, 1, D) * eps
    log_p_ref = (-0.5 * D * np.log(2 * np.pi)
                 - jnp.sum(jnp.log(scale).reshape(1, 1, D) + 0.5 * eps ** 2, axis=2))
    assert jnp.allclose(z, z_ref, atol=1e-5, rtol=1e-5)
    assert jnp.allclose(log_p, log_p_ref, atol=5e-4, rtol=1e-4)

    print("KERNEL_OK")
</pallas_src>

<mosaic_0001>
module attributes {stable_mosaic.version = 11 : i64} {
  func.func @_const_diag_gaussian_kernel(%arg0: i32, %arg1: memref<1x128xf32, #tpu.memory_space<vmem>>, %arg2: memref<1x128xf32, #tpu.memory_space<vmem>>, %arg3: memref<1x4xf32, #tpu.memory_space<vmem>>, %arg4: memref<4x128xf32, #tpu.memory_space<vmem>>, %arg5: memref<4x128xf32, #tpu.memory_space<vmem>>, %arg6: memref<4x4xf32, #tpu.memory_space<vmem>>) attributes {dimension_semantics = [#tpu.dimension_semantics<parallel>], iteration_bounds = array<i64: 1>, scalar_prefetch = 0 : i64, scratch_operands = 0 : i64, tpu.core_type = #tpu.core_type<tc>, window_params = [{pipeline_mode = #tpu.pipeline_mode<synchronous>, transform_indices = @transform_0, window_bounds = array<i64: 1, 128>}, {pipeline_mode = #tpu.pipeline_mode<synchronous>, transform_indices = @transform_1, window_bounds = array<i64: 1, 128>}, {pipeline_mode = #tpu.pipeline_mode<synchronous>, transform_indices = @transform_2, window_bounds = array<i64: 1, 4>}, {transform_indices = @transform_3, window_bounds = array<i64: 4, 128>}, {transform_indices = @transform_4, window_bounds = array<i64: 4, 128>}, {transform_indices = @transform_5, window_bounds = array<i64: 4, 4>}]} {
    %c0 = arith.constant 0 : index
    %c0_0 = arith.constant 0 : index
    %0 = vector.load %arg4[%c0, %c0_0] : memref<4x128xf32, #tpu.memory_space<vmem>>, vector<4x128xf32>
    %c0_1 = arith.constant 0 : index
    %c0_2 = arith.constant 0 : index
    %1 = vector.load %arg1[%c0_1, %c0_2] : memref<1x128xf32, #tpu.memory_space<vmem>>, vector<1x128xf32>
    %c0_3 = arith.constant 0 : index
    %c0_4 = arith.constant 0 : index
    %2 = vector.load %arg2[%c0_3, %c0_4] : memref<1x128xf32, #tpu.memory_space<vmem>>, vector<1x128xf32>
    %3 = vector.broadcast %2 : vector<1x128xf32> to vector<4x128xf32>
    %4 = arith.mulf %3, %0 : vector<4x128xf32>
    %5 = vector.broadcast %1 : vector<1x128xf32> to vector<4x128xf32>
    %6 = arith.addf %5, %4 : vector<4x128xf32>
    %c0_5 = arith.constant 0 : index
    %c0_6 = arith.constant 0 : index
    %7 = vector.load %arg5[%c0_5, %c0_6] : memref<4x128xf32, #tpu.memory_space<vmem>>, vector<4x128xf32>
    tpu.vector_store %arg5[%c0_5, %c0_6], %6 {strides = array<i32>} : memref<4x128xf32, #tpu.memory_space<vmem>>, vector<4x128xf32>,
    %8 = arith.mulf %0, %0 : vector<4x128xf32>
    %c0_7 = arith.constant 0 : index
    %c0_8 = arith.constant 0 : index
    %9 = vector.load %arg3[%c0_7, %c0_8] : memref<1x4xf32, #tpu.memory_space<vmem>>, vector<1x4xf32>
    %10 = vector.extract_strided_slice %8 {offsets = [0, 0], sizes = [4, 32], strides = [1, 1]} : vector<4x128xf32> to vector<4x32xf32>
    %cst = arith.constant dense<0.000000e+00> : vector<4xf32>
    %11 = vector.multi_reduction <add>, %10, %cst [1] : vector<4x32xf32> to vector<4xf32>
    %12 = vector.shape_cast %11 : vector<4xf32> to vector<4x1xf32>
    %13 = vector.extract_strided_slice %9 {offsets = [0, 0], sizes = [1, 1], strides = [1, 1]} : vector<1x4xf32> to vector<1x1xf32>
    %cst_9 = arith.constant 5.000000e-01 : f32
    %14 = vector.broadcast %cst_9 : f32 to vector<4x1xf32>
    %15 = arith.mulf %14, %12 : vector<4x1xf32>
    %16 = vector.broadcast %13 : vector<1x1xf32> to vector<4x1xf32>
    %17 = arith.subf %16, %15 : vector<4x1xf32>
    %c0_10 = arith.constant 0 : index
    %c0_11 = arith.constant 0 : index
    %18 = vector.load %arg6[%c0_10, %c0_11] : memref<4x4xf32, #tpu.memory_space<vmem>>, vector<4x1xf32>
    tpu.vector_store %arg6[%c0_10, %c0_11], %17 {strides = array<i32>} : memref<4x4xf32, #tpu.memory_space<vmem>>, vector<4x1xf32>,
    %19 = vector.extract_strided_slice %8 {offsets = [0, 32], sizes = [4, 32], strides = [1, 1]} : vector<4x128xf32> to vector<4x32xf32>
    %cst_12 = arith.constant dense<0.000000e+00> : vector<4xf32>
    %20 = vector.multi_reduction <add>, %19, %cst_12 [1] : vector<4x32xf32> to vector<4xf32>
    %21 = vector.shape_cast %20 : vector<4xf32> to vector<4x1xf32>
    %22 = vector.extract_strided_slice %9 {offsets = [0, 1], sizes = [1, 1], strides = [1, 1]} : vector<1x4xf32> to vector<1x1xf32>
    %cst_13 = arith.constant 5.000000e-01 : f32
    %23 = vector.broadcast %cst_13 : f32 to vector<4x1xf32>
    %24 = arith.mulf %23, %21 : vector<4x1xf32>
    %25 = vector.broadcast %22 : vector<1x1xf32> to vector<4x1xf32>
    %26 = arith.subf %25, %24 : vector<4x1xf32>
    %c0_14 = arith.constant 0 : index
    %c1 = arith.constant 1 : index
    %27 = vector.load %arg6[%c0_14, %c1] : memref<4x4xf32, #tpu.memory_space<vmem>>, vector<4x1xf32>
    tpu.vector_store %arg6[%c0_14, %c1], %26 {strides = array<i32>} : memref<4x4xf32, #tpu.memory_space<vmem>>, vector<4x1xf32>,
    %28 = vector.extract_strided_slice %8 {offsets = [0, 64], sizes = [4, 32], strides = [1, 1]} : vector<4x128xf32> to vector<4x32xf32>
    %cst_15 = arith.constant dense<0.000000e+00> : vector<4xf32>
    %29 = vector.multi_reduction <add>, %28, %cst_15 [1] : vector<4x32xf32> to vector<4xf32>
    %30 = vector.shape_cast %29 : vector<4xf32> to vector<4x1xf32>
    %31 = vector.extract_strided_slice %9 {offsets = [0, 2], sizes = [1, 1], strides = [1, 1]} : vector<1x4xf32> to vector<1x1xf32>
    %cst_16 = arith.constant 5.000000e-01 : f32
    %32 = vector.broadcast %cst_16 : f32 to vector<4x1xf32>
    %33 = arith.mulf %32, %30 : vector<4x1xf32>
    %34 = vector.broadcast %31 : vector<1x1xf32> to vector<4x1xf32>
    %35 = arith.subf %34, %33 : vector<4x1xf32>
    %c0_17 = arith.constant 0 : index
    %c2 = arith.constant 2 : index
    %36 = vector.load %arg6[%c0_17, %c2] : memref<4x4xf32, #tpu.memory_space<vmem>>, vector<4x1xf32>
    tpu.vector_store %arg6[%c0_17, %c2], %35 {strides = array<i32>} : memref<4x4xf32, #tpu.memory_space<vmem>>, vector<4x1xf32>,
    %37 = vector.extract_strided_slice %8 {offsets = [0, 96], sizes = [4, 32], strides = [1, 1]} : vector<4x128xf32> to vector<4x32xf32>
    %cst_18 = arith.constant dense<0.000000e+00> : vector<4xf32>
    %38 = vector.multi_reduction <add>, %37, %cst_18 [1] : vector<4x32xf32> to vector<4xf32>
    %39 = vector.shape_cast %38 : vector<4xf32> to vector<4x1xf32>
    %40 = vector.extract_strided_slice %9 {offsets = [0, 3], sizes = [1, 1], strides = [1, 1]} : vector<1x4xf32> to vector<1x1xf32>
    %cst_19 = arith.constant 5.000000e-01 : f32
    %41 = vector.broadcast %cst_19 : f32 to vector<4x1xf32>
    %42 = arith.mulf %41, %39 : vector<4x1xf32>
    %43 = vector.broadcast %40 : vector<1x1xf32> to vector<4x1xf32>
    %44 = arith.subf %43, %42 : vector<4x1xf32>
    %c0_20 = arith.constant 0 : index
    %c3 = arith.constant 3 : index
    %45 = vector.load %arg6[%c0_20, %c3] : memref<4x4xf32, #tpu.memory_space<vmem>>, vector<4x1xf32>
    tpu.vector_store %arg6[%c0_20, %c3], %44 {strides = array<i32>} : memref<4x4xf32, #tpu.memory_space<vmem>>, vector<4x1xf32>,
    return
  }
  func.func @transform_0(%arg0: i32) -> (i32, i32) {
    %c0_i32 = arith.constant 0 : i32
    %c0_i32_0 = arith.constant 0 : i32
    %c0_i32_1 = arith.constant 0 : i32
    return %c0_i32, %c0_i32_0 : i32, i32
  }
  func.func @transform_1(%arg0: i32) -> (i32, i32) {
    %c0_i32 = arith.constant 0 : i32
    %c0_i32_0 = arith.constant 0 : i32
    %c0_i32_1 = arith.constant 0 : i32
    return %c0_i32, %c0_i32_0 : i32, i32
  }
  func.func @transform_2(%arg0: i32) -> (i32, i32) {
    %c0_i32 = arith.constant 0 : i32
    %c0_i32_0 = arith.constant 0 : i32
    %c0_i32_1 = arith.constant 0 : i32
    return %c0_i32, %c0_i32_0 : i32, i32
  }
  func.func @transform_3(%arg0: i32) -> (i32, i32) {
    %c0_i32 = arith.constant 0 : i32
    %c0_i32_0 = arith.constant 0 : i32
    return %arg0, %c0_i32 : i32, i32
  }
  func.func @transform_4(%arg0: i32) -> (i32, i32) {
    %c0_i32 = arith.constant 0 : i32
    %c0_i32_0 = arith.constant 0 : i32
    return %arg0, %c0_i32 : i32, i32
  }
  func.func @transform_5(%arg0: i32) -> (i32, i32) {
    %c0_i32 = arith.constant 0 : i32
    %c0_i32_0 = arith.constant 0 : i32
    return %arg0, %c0_i32 : i32, i32
  }
}

</mosaic_0001>

<bundles_post_ra>
// kernel: tpu_custom_call.1
= control target key start
LH: loop header
LB: loop body
LE: loop exit
PB: predicated region body
PF: predicated region fallthrough
CT: control target
= control target key end

     0   :  { %11 = vsyncpa [#allocation3], 0  ;;  %s289_s0 = inlined_call_operand.hbm [shape: f32[1,128], index: 0, kind: input, shape index: {}]   ;;  %s290_s1 = inlined_call_operand.vmem [shape: f32[1,128], index: 1, kind: input, shape index: {}]   ;;  %s291_s2 = inlined_call_operand.vmem [shape: f32[1,4], index: 2, kind: input, shape index: {}]   ;;  %s292_s3 = inlined_call_operand.vmem [shape: f32[4,128], index: 3, kind: input, shape index: {}]   ;;  %s293_s4 = inlined_call_operand.hbm [shape: f32[4,128], index: 4, kind: output, shape index: {0}]   ;;  %s294_s5 = inlined_call_operand.hbm [shape: f32[4,4], index: 5, kind: output, shape index: {1}]  }
   0x1   :  { %12 = vsyncpa [#allocation4], 0 }
   0x2   :  { %13 = vsyncpa [#allocation7], 0  ;;  %s208_s18 = smov [#allocation2]   ;;  %s136_s22 = scalar_lea.hbm %s289_s0, 16 }
   0x3   :  { %s20_s19 = sshll.u32 %s208_s18, 4  ;;  %p137_p0 = scmp.ne.s32.totalorder %s289_s0, %s136_s22  ;;  %s21_s19 = int_to_ptr.vmem [resolvable:$true] %s20_s19 }
   0x4   :  { %p140_p1 = scmp.lt.u32.totalorder %s136_s22, %s289_s0 }
   0x6   :  { %p142_p2 = pnand %p140_p1, %p137_p0 }
   0x8   :  { %145 = shalt.err (!%p142_p2)
}
   0x9   :  { %s146_s27 = scalar_lea.vmem %s21_s19, 16  ;;  %s150_s28 = scalar_lea.vmem %s21_s19, 32 }
   0xa   :  { %p147_p3 = scmp.ne.s32.totalorder %s21_s19, %s146_s27  ;;  %p151_p4 = scmp.lt.s32.totalorder %s21_s19, %s21_s19 }
   0xb   :  { %p152_p5 = scmp.lt.s32.totalorder %s150_s28, %s146_s27 }
   0xd   :  { %p153_p6 = por %p152_p5, %p151_p4 }
   0xf   :  { %p154_p7 = pnand %p153_p6, %p147_p3 }
  0x11   :  { %157 = shalt.err (!%p154_p7)
}
  0x12   :  { %23 = dma.hbm_to_vmem [thread:$0]  %s289_s0, 16, %s21_s19, [#allocation3]  }
  0x13   :  { %202 = dma.done.wait [#allocation3], 16  }
  0x14   :  { %203 = vsyncadd [#allocation3], 4294967280  ;;  %v33_v0 = vld [vmem:[%s292_s3] sm:$0xf]  ;;  %s209_s8 = smov 96   ;;  %s210_s9 = smov 32  }
  0x15   :  { %v51_v1 = vmul.f32 %v33_v0, %v33_v0  ;;  %s211_s10 = smov 64   ;;  %vm53_vm0 = vcmask 257024   ;;  %v127_v9 = vld [vmem:[%s290_s1] ss:$0 sm:$0xff]  ;;  %v128_v11 = vld [vmem:[#allocation2] ss:$0 sm:$0xff] }
  0x16   :  { %v42_v10 = vmul.f32 %v127_v9, %v33_v0  ;;  %s212_s11 = smov [#allocation5]  }
  0x17   :  { %68 = vrot.lane.b32.xlu0 %v51_v1, %s209_s8  ;;  %88 = vrot.lane.b32.xlu1 %v51_v1, %s210_s9  ;;  %v54_v2 = vsel %vm53_vm0, %v51_v1, 0.0  ;;  %s104_s12 = sshll.u32 %s212_s11, 4  ;;  %s105_s12 = int_to_ptr.vmem [resolvable:$true] %s104_s12 }
  0x18   :  { %v49_v12 = vadd.f32 %v128_v11, %v42_v10  ;;  %s158_s13 = scalar_lea.vmem %s105_s12, 64  ;;  %p163_p9 = scmp.lt.s32.totalorder %s105_s12, %s105_s12 }
  0x19   :  { %p159_p8 = scmp.ne.s32.totalorder %s105_s12, %s158_s13  ;;  %p164_p10 = scmp.lt.s32.totalorder %s158_s13, %s158_s13 }
  0x1a   :  { %50 = vst [vmem:[#allocation5] sm:$0xf] %v49_v12 }
  0x1b   :  { %78 = vrot.lane.b32.xlu0 %v51_v1, %s211_s10  ;;  %p165_p11 = por %p164_p10, %p163_p9 }
  0x1d   :  { %p166_p12 = pnand %p165_p11, %p159_p8 }
  0x3b   :  { %55 = vadd.xlane.f32.xlu1 %v54_v2 }
  0x89   :  { %v69_v3 = vpop.permute.xlu0 %68  ;;  %v89_v4 = vpop.permute.xlu1 %88 }
  0x8a   :  { %v71_v5 = vsel %vm53_vm0, %v69_v3, 0.0  ;;  %v91_v6 = vsel %vm53_vm0, %v89_v4, 0.0 }
  0x8b   :  { %72 = vadd.xlane.f32.xlu0 %v71_v5  ;;  %92 = vadd.xlane.f32.xlu1 %v91_v6 }
  0x8d   :  { %v79_v7 = vpop.permute.xlu0 %78 }
  0x8e   :  { %v81_v8 = vsel %vm53_vm0, %v79_v7, 0.0 }
  0x8f   :  { %82 = vadd.xlane.f32.xlu0 %v81_v8 }
  0x90   :  { %169 = shalt.err (!%p166_p12)
}
  0x91   :  { %s170_s16 = scalar_lea.hbm %s293_s4, 64 }
  0x92   :  { %p171_p13 = scmp.ne.s32.totalorder %s293_s4, %s170_s16  ;;  %p174_p0 = scmp.lt.u32.totalorder %s170_s16, %s293_s4 }
  0x94   :  { %p176_p1 = pnand %p174_p0, %p171_p13 }
  0x96   :  { %179 = shalt.err (!%p176_p1)
}
  0x97   :  { %107 = dma.vmem_to_hbm [thread:$0]  %s105_s12, 64, %s293_s4, [#allocation4]   ;;  %v129_v13 = vld [vmem:[%s291_s2] ss:$0 sm:$0xff]  ;;  %vm65_vm1 = vcmask 3072   ;;  %vm76_vm2 = vcmask 11272  }
  0x98   :  { %s213_s24 = smov [#allocation6]   ;;  %vm86_vm3 = vcmask 19472   ;;  %vm96_vm4 = vcmask 27672  }
  0x99   :  { %s114_s4 = sshll.u32 %s213_s24, 4  ;;  %s115_s4 = int_to_ptr.vmem [resolvable:$true] %s114_s4 }
  0x9a   :  { %s180_s2 = scalar_lea.vmem %s115_s4, 64  ;;  %p185_p3 = scmp.lt.s32.totalorder %s115_s4, %s115_s4 }
  0x9b   :  { %p181_p2 = scmp.ne.s32.totalorder %s115_s4, %s180_s2  ;;  %p186_p4 = scmp.lt.s32.totalorder %s180_s2, %s180_s2 }
  0x9d   :  { %p187_p5 = por %p186_p4, %p185_p3 }
  0x9f   :  { %p188_p6 = pnand %p187_p5, %p181_p2 }
  0xc8   :  { %v56_v14 = vpop.xlane.xlu1 %55 }
  0xc9   :  { %v57_v15 = vmul.f32 0.5, %v56_v14 }
  0xcb   :  { %v64_v16 = vsub.f32 %v129_v13, %v57_v15 }
  0xcd   :  { %66 = vst.msk [vmem:[#allocation6] sm:$0xf] %vm65_vm1, %v64_v16 }
 0x118   :  { %v73_v17 = vpop.xlane.xlu0 %72  ;;  %v93_v18 = vpop.xlane.xlu1 %92 }
 0x119   :  { %v74_v19 = vmul.f32 0.5, %v73_v17  ;;  %v94_v20 = vmul.f32 0.5, %v93_v18 }
 0x11b   :  { %v75_v21 = vsub.f32 %v129_v13, %v74_v19  ;;  %v95_v24 = vsub.f32 %v129_v13, %v94_v20 }
 0x11c   :  { %v83_v22 = vpop.xlane.xlu0 %82 }
 0x11d   :  { %v84_v23 = vmul.f32 0.5, %v83_v22  ;;  %77 = vst.msk [vmem:[#allocation6] sm:$0xf] %vm76_vm2, %v75_v21 }
 0x11f   :  { %v85_v25 = vsub.f32 %v129_v13, %v84_v23 }
 0x121   :  { %87 = vst.msk [vmem:[#allocation6] sm:$0xf] %vm86_vm3, %v85_v25 }
 0x122   :  { %97 = vst.msk [vmem:[#allocation6] sm:$0xf] %vm96_vm4, %v95_v24 }
 0x123   :  { %191 = shalt.err (!%p188_p6)
}
 0x124   :  { %s192_s27 = scalar_lea.hbm %s294_s5, 64 }
 0x125   :  { %p193_p7 = scmp.ne.s32.totalorder %s294_s5, %s192_s27  ;;  %p196_p8 = scmp.lt.u32.totalorder %s192_s27, %s294_s5 }
 0x127   :  { %p198_p9 = pnand %p196_p8, %p193_p7 }
 0x129   :  { %201 = shalt.err (!%p198_p9)
}
 0x12a   :  { %117 = dma.vmem_to_hbm [thread:$0]  %s115_s4, 64, %s294_s5, [#allocation7]  }
 0x12b   :  { %204 = dma.done.wait [#allocation4], 64  }
 0x12c   :  { %205 = vsyncadd [#allocation4], 4294967232 }
 0x12d   :  { %206 = dma.done.wait [#allocation7], 64  }
 0x12e   :  { %207 = vsyncadd [#allocation7], 4294967232 }
 0x12f   :  { %124 = vsyncpa [#allocation3], 1 }
 0x130   :  { %125 = vsyncpa [#allocation4], 1 }
 0x131   :  { %126 = vsyncpa [#allocation7], 1 }

</bundles_post_ra>
